<compile_context>
chip_gen: v7x
topology: tpu7x:2x2x1
jax: 0.10.0
libtpu: 0.0.40
codegen_flags: <defaults>
</compile_context>

<pallas_src>
import jax
import jax.numpy as jnp
from jax.experimental import pallas as pl
from jax.experimental.pallas import tpu as pltpu

# ----------------------------- model hyper-params (small) -------------------
SEQ, BATCH = 8, 4
BATCH_PAD = 8                    # sublane-aligned padded batch
NTOKEN, NINP, NHID = 64, 32, 32
NLAYERS = 1
NF5, NF3 = 100, 100              # filter counts for kernel widths 5 and 3
IN_DIM = NF5 + NF3               # = 200 -> LSTM input size (unpadded / PyTorch layout)
PADF = 128                       # lane-aligned padded filter count per kernel width
CONV_IN = 5 * NINP + 3 * NINP    # 256: unfolded tap width ([k=5 taps | k=3 taps])
CONV_OUT = 2 * PADF              # 256: padded conv feature width
NT_PAD = 128                     # lane-aligned padded vocab for the decoder output


# ----------------------------- fused kernel ---------------------------------
def _fused_kernel(x_ref, wconv_ref, bconv_ref, wih_ref, whh_ref, blstm_ref,
                  h0_ref, c0_ref, wdec_ref, bdec_ref,
                  dec_ref, hn_ref, cn_ref, out_sc):
    nb, nh = BATCH_PAD, NHID

    # ---- MultiConv (k=5 & k=3, "same" padding, stride 1) as one MXU matmul ----
    # x_ref is the wrapper-built unfolded input (SEQ*8, 256) bf16; wconv is the
    # block-diagonal [k5 | k3] weight, filter counts zero-padded 100 -> 128.
    conv = jnp.dot(x_ref[...], wconv_ref[...], preferred_element_type=jnp.float32)
    conv = jnp.maximum(conv + bconv_ref[...], 0.0)                    # (64, 256) f32
    # TODO(synk): MultiConvModule source not provided; assumes ReLU activation,
    # pooling=False, and [k=5, k=3] feature concatenation order.

    # ---- LSTM: input projection hoisted out of the serial recurrence ----------
    gates_x = (jnp.dot(conv.astype(jnp.bfloat16), wih_ref[...],
                       preferred_element_type=jnp.float32)
               + blstm_ref[...])                                      # (64, 4*nh) f32

    whh = whh_ref[...]                                                # bf16 (nh, 4*nh)
    h = h0_ref[...]                                                   # f32 (8, nh)
    c = c0_ref[...]
    h_bf = h.astype(jnp.bfloat16)
    for t in range(SEQ):                                              # statically unrolled
        # 8-row aligned slice of the hoisted input projection (off the serial chain)
        g = (gates_x[t * nb:(t + 1) * nb, :]
             + jnp.dot(h_bf, whh, preferred_element_type=jnp.float32))  # (8, 4*nh)
        # full-width nonlinearities over the (8,128) gate vreg, then lane slices.
        sg = jax.nn.sigmoid(g)                                        # EUP, f32
        tg = jnp.tanh(g)                                              # EUP, f32
        i = sg[:, 0 * nh:1 * nh]                                      # PyTorch order i,f,g,o
        f = sg[:, 1 * nh:2 * nh]
        gg = tg[:, 2 * nh:3 * nh]
        o = sg[:, 3 * nh:4 * nh]
        c = f * c + i * gg
        h = o * jnp.tanh(c)
        h_bf = h.astype(jnp.bfloat16)                                 # reused next step
        out_sc[t * nb:(t + 1) * nb, :] = h_bf                         # aligned 8-row store

    # ---- decoder: Linear(nhid, ntoken) padded to 128 lane-dense output ---------
    dec_ref[...] = (jnp.dot(out_sc[...], wdec_ref[...],
                            preferred_element_type=jnp.float32) + bdec_ref[...])
    hn_ref[...] = h
    cn_ref[...] = c


# ----------------------------- param repacking ------------------------------
def prep_params(params):
    """One-time repack of PyTorch-layout params into the fused, lane-aligned layout."""
    # block-diagonal conv weight: [k=5 taps (160 rows) | k=3 taps (96 rows)] x
    #                             [k=5 feats (128 cols) | k=3 feats (128 cols)]
    w5 = params["conv_w5"].reshape(5 * NINP, NF5)      # row d*NINP + c = conv_w5[d, c, :]
    w3 = params["conv_w3"].reshape(3 * NINP, NF3)
    wconv = jnp.zeros((CONV_IN, CONV_OUT), jnp.float32)
    wconv = wconv.at[:5 * NINP, :NF5].set(w5)
    wconv = wconv.at[5 * NINP:, PADF:PADF + NF3].set(w3)
    bconv = jnp.zeros((1, CONV_OUT), jnp.float32)
    bconv = bconv.at[0, :NF5].set(params["conv_b5"])
    bconv = bconv.at[0, PADF:PADF + NF3].set(params["conv_b3"])

    # W_ih rows re-indexed to the padded conv feature layout (zero rows on padding).
    wih = jnp.zeros((CONV_OUT, 4 * NHID), jnp.float32)
    wih = wih.at[:NF5].set(params["lstm_wih"][:NF5])
    wih = wih.at[PADF:PADF + NF3].set(params["lstm_wih"][NF5:])

    # decoder padded to 128 output lanes (zero pad columns); sliced off in wrapper.
    wdec = jnp.zeros((NHID, NT_PAD), jnp.float32).at[:, :NTOKEN].set(params["dec_w"])
    bdec = jnp.zeros((1, NT_PAD), jnp.float32).at[0, :NTOKEN].set(params["dec_b"])

    return {
        "encoder_w": params["encoder_w"],
        "wconv": wconv.astype(jnp.bfloat16),
        "bconv": bconv,
        "wih": wih.astype(jnp.bfloat16),
        "whh": params["lstm_whh"].astype(jnp.bfloat16),
        "blstm": params["lstm_b"],
        "wdec": wdec.astype(jnp.bfloat16),
        "bdec": bdec,
    }


# ----------------------------- full forward ---------------------------------
@jax.jit
def model_forward(prepped, tokens, hidden):
    # Encoder gather + "same" zero padding + conv unfold + batch pad: pure layout
    # plumbing, fused by XLA into the producers of the single pallas_call.
    # Dropout = identity (eval mode).
    emb = jnp.take(prepped["encoder_w"], tokens, axis=0)            # (SEQ, B, NINP)
    emb_pad = jnp.pad(emb, ((2, 2), (0, 0), (0, 0)))                # (SEQ+4, B, NINP)
    taps = [emb_pad[d:d + SEQ] for d in range(5)]                   # k=5 taps
    taps += [emb_pad[d + 1:d + 1 + SEQ] for d in range(3)]          # k=3 taps
    x = jnp.concatenate(taps, axis=-1)                              # (SEQ, B, 256)
    x = jnp.pad(x, ((0, 0), (0, BATCH_PAD - BATCH), (0, 0)))        # (SEQ, 8, 256)
    x_unf = x.reshape(SEQ * BATCH_PAD, CONV_IN).astype(jnp.bfloat16)

    h0, c0 = hidden
    h0p = jnp.pad(h0[0], ((0, BATCH_PAD - BATCH), (0, 0)))          # (8, NHID)
    c0p = jnp.pad(c0[0], ((0, BATCH_PAD - BATCH), (0, 0)))

    dec_pad, h_n, c_n = pl.pallas_call(
        _fused_kernel,
        out_shape=(jax.ShapeDtypeStruct((SEQ * BATCH_PAD, NT_PAD), jnp.float32),
                   jax.ShapeDtypeStruct((BATCH_PAD, NHID), jnp.float32),
                   jax.ShapeDtypeStruct((BATCH_PAD, NHID), jnp.float32)),
        scratch_shapes=[pltpu.VMEM((SEQ * BATCH_PAD, NHID), jnp.bfloat16)],
    )(x_unf, prepped["wconv"], prepped["bconv"], prepped["wih"],
      prepped["whh"], prepped["blstm"], h0p, c0p,
      prepped["wdec"], prepped["bdec"])

    decoded = dec_pad.reshape(SEQ, BATCH_PAD, NT_PAD)[:, :BATCH, :NTOKEN]
    return decoded, (h_n[:BATCH][None], c_n[:BATCH][None])


# ----------------------------- main ------------------------------------------
if __name__ == "__main__":
    key = jax.random.PRNGKey(0)
    ks = jax.random.split(key, 10)
    params = {
        "encoder_w": jax.random.uniform(ks[0], (NTOKEN, NINP), jnp.float32, -0.1, 0.1),
        # conv weights stored as (k, in_channels, out_channels); a real PyTorch
        # Conv1d weight (out, in, k) would need a (2,1,0) transpose before reshape.
        "conv_w5": jax.random.normal(ks[1], (5, NINP, NF5), jnp.float32) * 0.05,
        "conv_b5": jnp.zeros((NF5,), jnp.float32),
        "conv_w3": jax.random.normal(ks[2], (3, NINP, NF3), jnp.float32) * 0.05,
        "conv_b3": jnp.zeros((NF3,), jnp.float32),
        # LSTM weights stored transposed (in, 4*hid) for x @ W; b = b_ih + b_hh
        "lstm_wih": jax.random.uniform(ks[3], (IN_DIM, 4 * NHID), jnp.float32, -0.1, 0.1),
        "lstm_whh": jax.random.uniform(ks[4], (NHID, 4 * NHID), jnp.float32, -0.1, 0.1),
        "lstm_b": jax.random.uniform(ks[5], (1, 4 * NHID), jnp.float32, -0.1, 0.1),
        # decoder: Linear(nhid, ntoken), weight uniform(-0.1, 0.1), bias 0
        "dec_w": jax.random.uniform(ks[6], (NHID, NTOKEN), jnp.float32, -0.1, 0.1),
        "dec_b": jnp.zeros((NTOKEN,), jnp.float32),
    }
    prepped = prep_params(params)

    tokens = jax.random.randint(ks[7], (SEQ, BATCH), 0, NTOKEN, dtype=jnp.int32)
    hidden = (jnp.zeros((NLAYERS, BATCH, NHID), jnp.float32),
              jnp.zeros((NLAYERS, BATCH, NHID), jnp.float32))

    decoded, (h_n, c_n) = model_forward(prepped, tokens, hidden)
    jax.block_until_ready(decoded)

    assert decoded.shape == (SEQ, BATCH, NTOKEN)
    assert h_n.shape == (NLAYERS, BATCH, NHID) and c_n.shape == (NLAYERS, BATCH, NHID)
    assert bool(jnp.all(jnp.isfinite(decoded)))
    assert bool(jnp.all(jnp.isfinite(h_n))) and bool(jnp.all(jnp.isfinite(c_n)))
    print("KERNEL_OK")
</pallas_src>

<mosaic_0001>
module attributes {stable_mosaic.version = 11 : i64} {
  func.func @_fused_kernel(%arg0: memref<64x256xbf16, #tpu.memory_space<vmem>>, %arg1: memref<256x256xbf16, #tpu.memory_space<vmem>>, %arg2: memref<1x256xf32, #tpu.memory_space<vmem>>, %arg3: memref<256x128xbf16, #tpu.memory_space<vmem>>, %arg4: memref<32x128xbf16, #tpu.memory_space<vmem>>, %arg5: memref<1x128xf32, #tpu.memory_space<vmem>>, %arg6: memref<8x32xf32, #tpu.memory_space<vmem>>, %arg7: memref<8x32xf32, #tpu.memory_space<vmem>>, %arg8: memref<32x128xbf16, #tpu.memory_space<vmem>>, %arg9: memref<1x128xf32, #tpu.memory_space<vmem>>, %arg10: memref<64x128xf32, #tpu.memory_space<vmem>>, %arg11: memref<8x32xf32, #tpu.memory_space<vmem>>, %arg12: memref<8x32xf32, #tpu.memory_space<vmem>>, %arg13: memref<64x32xbf16, #tpu.memory_space<vmem>>) attributes {dimension_semantics = [], scalar_prefetch = 0 : i64, scratch_operands = 1 : i64, tpu.core_type = #tpu.core_type<tc>} {
    %c0 = arith.constant 0 : index
    %c0_0 = arith.constant 0 : index
    %0 = vector.load %arg0[%c0, %c0_0] : memref<64x256xbf16, #tpu.memory_space<vmem>>, vector<64x256xbf16>
    %c0_1 = arith.constant 0 : index
    %c0_2 = arith.constant 0 : index
    %1 = vector.load %arg1[%c0_1, %c0_2] : memref<256x256xbf16, #tpu.memory_space<vmem>>, vector<256x256xbf16>
    %cst = arith.constant dense<0.000000e+00> : vector<64x256xf32>
    %2 = tpu.matmul %0, %1, %cst {dimension_numbers = #tpu.dot_dimension_numbers<[1], [0], [0], [1], [0, 0, 1, 1], [], []>} : vector<64x256xbf16>, vector<256x256xbf16>, vector<64x256xf32> -> vector<64x256xf32>
    %c0_3 = arith.constant 0 : index
    %c0_4 = arith.constant 0 : index
    %3 = vector.load %arg2[%c0_3, %c0_4] : memref<1x256xf32, #tpu.memory_space<vmem>>, vector<1x256xf32>
    %4 = vector.broadcast %3 : vector<1x256xf32> to vector<64x256xf32>
    %5 = arith.addf %2, %4 : vector<64x256xf32>
    %cst_5 = arith.constant 0.000000e+00 : f32
    %6 = vector.broadcast %cst_5 : f32 to vector<64x256xf32>
    %7 = arith.maximumf %5, %6 : vector<64x256xf32>
    %8 = arith.truncf %7 : vector<64x256xf32> to vector<64x256xbf16>
    %c0_6 = arith.constant 0 : index
    %c0_7 = arith.constant 0 : index
    %9 = vector.load %arg3[%c0_6, %c0_7] : memref<256x128xbf16, #tpu.memory_space<vmem>>, vector<256x128xbf16>
    %cst_8 = arith.constant dense<0.000000e+00> : vector<64x128xf32>
    %10 = tpu.matmul %8, %9, %cst_8 {dimension_numbers = #tpu.dot_dimension_numbers<[1], [0], [0], [1], [0, 0, 1, 1], [], []>} : vector<64x256xbf16>, vector<256x128xbf16>, vector<64x128xf32> -> vector<64x128xf32>
    %c0_9 = arith.constant 0 : index
    %c0_10 = arith.constant 0 : index
    %11 = vector.load %arg5[%c0_9, %c0_10] : memref<1x128xf32, #tpu.memory_space<vmem>>, vector<1x128xf32>
    %12 = vector.broadcast %11 : vector<1x128xf32> to vector<64x128xf32>
    %13 = arith.addf %10, %12 : vector<64x128xf32>
    %c0_11 = arith.constant 0 : index
    %c0_12 = arith.constant 0 : index
    %14 = vector.load %arg4[%c0_11, %c0_12] : memref<32x128xbf16, #tpu.memory_space<vmem>>, vector<32x128xbf16>
    %c0_13 = arith.constant 0 : index
    %c0_14 = arith.constant 0 : index
    %15 = vector.load %arg6[%c0_13, %c0_14] : memref<8x32xf32, #tpu.memory_space<vmem>>, vector<8x32xf32>
    %c0_15 = arith.constant 0 : index
    %c0_16 = arith.constant 0 : index
    %16 = vector.load %arg7[%c0_15, %c0_16] : memref<8x32xf32, #tpu.memory_space<vmem>>, vector<8x32xf32>
    %17 = arith.truncf %15 : vector<8x32xf32> to vector<8x32xbf16>
    %18 = vector.extract_strided_slice %13 {offsets = [0, 0], sizes = [8, 128], strides = [1, 1]} : vector<64x128xf32> to vector<8x128xf32>
    %cst_17 = arith.constant dense<0.000000e+00> : vector<8x128xf32>
    %19 = tpu.matmul %17, %14, %cst_17 {dimension_numbers = #tpu.dot_dimension_numbers<[1], [0], [0], [1], [0, 0, 1, 1], [], []>} : vector<8x32xbf16>, vector<32x128xbf16>, vector<8x128xf32> -> vector<8x128xf32>
    %20 = arith.addf %18, %19 : vector<8x128xf32>
    %21 = arith.negf %20 : vector<8x128xf32>
    %22 = math.exp %21 : vector<8x128xf32>
    %cst_18 = arith.constant 1.000000e+00 : f32
    %23 = vector.broadcast %cst_18 : f32 to vector<8x128xf32>
    %24 = arith.addf %23, %22 : vector<8x128xf32>
    %25 = arith.divf %23, %24 : vector<8x128xf32>
    %26 = math.tanh %20 : vector<8x128xf32>
    %27 = vector.extract_strided_slice %25 {offsets = [0, 0], sizes = [8, 32], strides = [1, 1]} : vector<8x128xf32> to vector<8x32xf32>
    %28 = vector.extract_strided_slice %25 {offsets = [0, 32], sizes = [8, 32], strides = [1, 1]} : vector<8x128xf32> to vector<8x32xf32>
    %29 = vector.extract_strided_slice %26 {offsets = [0, 64], sizes = [8, 32], strides = [1, 1]} : vector<8x128xf32> to vector<8x32xf32>
    %30 = vector.extract_strided_slice %25 {offsets = [0, 96], sizes = [8, 32], strides = [1, 1]} : vector<8x128xf32> to vector<8x32xf32>
    %31 = arith.mulf %28, %16 : vector<8x32xf32>
    %32 = arith.mulf %27, %29 : vector<8x32xf32>
    %33 = arith.addf %31, %32 : vector<8x32xf32>
    %34 = math.tanh %33 : vector<8x32xf32>
    %35 = arith.mulf %30, %34 : vector<8x32xf32>
    %36 = arith.truncf %35 : vector<8x32xf32> to vector<8x32xbf16>
    %c0_19 = arith.constant 0 : index
    %c0_20 = arith.constant 0 : index
    %37 = vector.load %arg13[%c0_19, %c0_20] : memref<64x32xbf16, #tpu.memory_space<vmem>>, vector<8x32xbf16>
    tpu.vector_store %arg13[%c0_19, %c0_20], %36 {strides = array<i32>} : memref<64x32xbf16, #tpu.memory_space<vmem>>, vector<8x32xbf16>,
    %38 = vector.extract_strided_slice %13 {offsets = [8, 0], sizes = [8, 128], strides = [1, 1]} : vector<64x128xf32> to vector<8x128xf32>
    %cst_21 = arith.constant dense<0.000000e+00> : vector<8x128xf32>
    %39 = tpu.matmul %36, %14, %cst_21 {dimension_numbers = #tpu.dot_dimension_numbers<[1], [0], [0], [1], [0, 0, 1, 1], [], []>} : vector<8x32xbf16>, vector<32x128xbf16>, vector<8x128xf32> -> vector<8x128xf32>
    %40 = arith.addf %38, %39 : vector<8x128xf32>
    %41 = arith.negf %40 : vector<8x128xf32>
    %42 = math.exp %41 : vector<8x128xf32>
    %cst_22 = arith.constant 1.000000e+00 : f32
    %43 = vector.broadcast %cst_22 : f32 to vector<8x128xf32>
    %44 = arith.addf %43, %42 : vector<8x128xf32>
    %45 = arith.divf %43, %44 : vector<8x128xf32>
    %46 = math.tanh %40 : vector<8x128xf32>
    %47 = vector.extract_strided_slice %45 {offsets = [0, 0], sizes = [8, 32], strides = [1, 1]} : vector<8x128xf32> to vector<8x32xf32>
    %48 = vector.extract_strided_slice %45 {offsets = [0, 32], sizes = [8, 32], strides = [1, 1]} : vector<8x128xf32> to vector<8x32xf32>
    %49 = vector.extract_strided_slice %46 {offsets = [0, 64], sizes = [8, 32], strides = [1, 1]} : vector<8x128xf32> to vector<8x32xf32>
    %50 = vector.extract_strided_slice %45 {offsets = [0, 96], sizes = [8, 32], strides = [1, 1]} : vector<8x128xf32> to vector<8x32xf32>
    %51 = arith.mulf %48, %33 : vector<8x32xf32>
    %52 = arith.mulf %47, %49 : vector<8x32xf32>
    %53 = arith.addf %51, %52 : vector<8x32xf32>
    %54 = math.tanh %53 : vector<8x32xf32>
    %55 = arith.mulf %50, %54 : vector<8x32xf32>
    %56 = arith.truncf %55 : vector<8x32xf32> to vector<8x32xbf16>
    %c8 = arith.constant 8 : index
    %c0_23 = arith.constant 0 : index
    %57 = vector.load %arg13[%c8, %c0_23] : memref<64x32xbf16, #tpu.memory_space<vmem>>, vector<8x32xbf16>
    tpu.vector_store %arg13[%c8, %c0_23], %56 {strides = array<i32>} : memref<64x32xbf16, #tpu.memory_space<vmem>>, vector<8x32xbf16>,
    %58 = vector.extract_strided_slice %13 {offsets = [16, 0], sizes = [8, 128], strides = [1, 1]} : vector<64x128xf32> to vector<8x128xf32>
    %cst_24 = arith.constant dense<0.000000e+00> : vector<8x128xf32>
    %59 = tpu.matmul %56, %14, %cst_24 {dimension_numbers = #tpu.dot_dimension_numbers<[1], [0], [0], [1], [0, 0, 1, 1], [], []>} : vector<8x32xbf16>, vector<32x128xbf16>, vector<8x128xf32> -> vector<8x128xf32>
    %60 = arith.addf %58, %59 : vector<8x128xf32>
    %61 = arith.negf %60 : vector<8x128xf32>
    %62 = math.exp %61 : vector<8x128xf32>
    %cst_25 = arith.constant 1.000000e+00 : f32
    %63 = vector.broadcast %cst_25 : f32 to vector<8x128xf32>
    %64 = arith.addf %63, %62 : vector<8x128xf32>
    %65 = arith.divf %63, %64 : vector<8x128xf32>
    %66 = math.tanh %60 : vector<8x128xf32>
    %67 = vector.extract_strided_slice %65 {offsets = [0, 0], sizes = [8, 32], strides = [1, 1]} : vector<8x128xf32> to vector<8x32xf32>
    %68 = vector.extract_strided_slice %65 {offsets = [0, 32], sizes = [8, 32], strides = [1, 1]} : vector<8x128xf32> to vector<8x32xf32>
    %69 = vector.extract_strided_slice %66 {offsets = [0, 64], sizes = [8, 32], strides = [1, 1]} : vector<8x128xf32> to vector<8x32xf32>
    %70 = vector.extract_strided_slice %65 {offsets = [0, 96], sizes = [8, 32], strides = [1, 1]} : vector<8x128xf32> to vector<8x32xf32>
    %71 = arith.mulf %68, %53 : vector<8x32xf32>
    %72 = arith.mulf %67, %69 : vector<8x32xf32>
    %73 = arith.addf %71, %72 : vector<8x32xf32>
    %74 = math.tanh %73 : vector<8x32xf32>
    %75 = arith.mulf %70, %74 : vector<8x32xf32>
    %76 = arith.truncf %75 : vector<8x32xf32> to vector<8x32xbf16>
    %c16 = arith.constant 16 : index
    %c0_26 = arith.constant 0 : index
    %77 = vector.load %arg13[%c16, %c0_26] : memref<64x32xbf16, #tpu.memory_space<vmem>>, vector<8x32xbf16>
    tpu.vector_store %arg13[%c16, %c0_26], %76 {strides = array<i32>} : memref<64x32xbf16, #tpu.memory_space<vmem>>, vector<8x32xbf16>,
    %78 = vector.extract_strided_slice %13 {offsets = [24, 0], sizes = [8, 128], strides = [1, 1]} : vector<64x128xf32> to vector<8x128xf32>
    %cst_27 = arith.constant dense<0.000000e+00> : vector<8x128xf32>
    %79 = tpu.matmul %76, %14, %cst_27 {dimension_numbers = #tpu.dot_dimension_numbers<[1], [0], [0], [1], [0, 0, 1, 1], [], []>} : vector<8x32xbf16>, vector<32x128xbf16>, vector<8x128xf32> -> vector<8x128xf32>
    %80 = arith.addf %78, %79 : vector<8x128xf32>
    %81 = arith.negf %80 : vector<8x128xf32>
    %82 = math.exp %81 : vector<8x128xf32>
    %cst_28 = arith.constant 1.000000e+00 : f32
    %83 = vector.broadcast %cst_28 : f32 to vector<8x128xf32>
    %84 = arith.addf %83, %82 : vector<8x128xf32>
    %85 = arith.divf %83, %84 : vector<8x128xf32>
    %86 = math.tanh %80 : vector<8x128xf32>
    %87 = vector.extract_strided_slice %85 {offsets = [0, 0], sizes = [8, 32], strides = [1, 1]} : vector<8x128xf32> to vector<8x32xf32>
    %88 = vector.extract_strided_slice %85 {offsets = [0, 32], sizes = [8, 32], strides = [1, 1]} : vector<8x128xf32> to vector<8x32xf32>
    %89 = vector.extract_strided_slice %86 {offsets = [0, 64], sizes = [8, 32], strides = [1, 1]} : vector<8x128xf32> to vector<8x32xf32>
    %90 = vector.extract_strided_slice %85 {offsets = [0, 96], sizes = [8, 32], strides = [1, 1]} : vector<8x128xf32> to vector<8x32xf32>
    %91 = arith.mulf %88, %73 : vector<8x32xf32>
    %92 = arith.mulf %87, %89 : vector<8x32xf32>
    %93 = arith.addf %91, %92 : vector<8x32xf32>
    %94 = math.tanh %93 : vector<8x32xf32>
    %95 = arith.mulf %90, %94 : vector<8x32xf32>
    %96 = arith.truncf %95 : vector<8x32xf32> to vector<8x32xbf16>
    %c24 = arith.constant 24 : index
    %c0_29 = arith.constant 0 : index
    %97 = vector.load %arg13[%c24, %c0_29] : memref<64x32xbf16, #tpu.memory_space<vmem>>, vector<8x32xbf16>
    tpu.vector_store %arg13[%c24, %c0_29], %96 {strides = array<i32>} : memref<64x32xbf16, #tpu.memory_space<vmem>>, vector<8x32xbf16>,
    %98 = vector.extract_strided_slice %13 {offsets = [32, 0], sizes = [8, 128], strides = [1, 1]} : vector<64x128xf32> to vector<8x128xf32>
    %cst_30 = arith.constant dense<0.000000e+00> : vector<8x128xf32>
    %99 = tpu.matmul %96, %14, %cst_30 {dimension_numbers = #tpu.dot_dimension_numbers<[1], [0], [0], [1], [0, 0, 1, 1], [], []>} : vector<8x32xbf16>, vector<32x128xbf16>, vector<8x128xf32> -> vector<8x128xf32>
    %100 = arith.addf %98, %99 : vector<8x128xf32>
    %101 = arith.negf %100 : vector<8x128xf32>
    %102 = math.exp %101 : vector<8x128xf32>
    %cst_31 = arith.constant 1.000000e+00 : f32
    %103 = vector.broadcast %cst_31 : f32 to vector<8x128xf32>
    %104 = arith.addf %103, %102 : vector<8x128xf32>
    %105 = arith.divf %103, %104 : vector<8x128xf32>
    %106 = math.tanh %100 : vector<8x128xf32>
    %107 = vector.extract_strided_slice %105 {offsets = [0, 0], sizes = [8, 32], strides = [1, 1]} : vector<8x128xf32> to vector<8x32xf32>
    %108 = vector.extract_strided_slice %105 {offsets = [0, 32], sizes = [8, 32], strides = [1, 1]} : vector<8x128xf32> to vector<8x32xf32>
    %109 = vector.extract_strided_slice %106 {offsets = [0, 64], sizes = [8, 32], strides = [1, 1]} : vector<8x128xf32> to vector<8x32xf32>
    %110 = vector.extract_strided_slice %105 {offsets = [0, 96], sizes = [8, 32], strides = [1, 1]} : vector<8x128xf32> to vector<8x32xf32>
    %111 = arith.mulf %108, %93 : vector<8x32xf32>
    %112 = arith.mulf %107, %109 : vector<8x32xf32>
    %113 = arith.addf %111, %112 : vector<8x32xf32>
    %114 = math.tanh %113 : vector<8x32xf32>
    %115 = arith.mulf %110, %114 : vector<8x32xf32>
    %116 = arith.truncf %115 : vector<8x32xf32> to vector<8x32xbf16>
    %c32 = arith.constant 32 : index
    %c0_32 = arith.constant 0 : index
    %117 = vector.load %arg13[%c32, %c0_32] : memref<64x32xbf16, #tpu.memory_space<vmem>>, vector<8x32xbf16>
    tpu.vector_store %arg13[%c32, %c0_32], %116 {strides = array<i32>} : memref<64x32xbf16, #tpu.memory_space<vmem>>, vector<8x32xbf16>,
    %118 = vector.extract_strided_slice %13 {offsets = [40, 0], sizes = [8, 128], strides = [1, 1]} : vector<64x128xf32> to vector<8x128xf32>
    %cst_33 = arith.constant dense<0.000000e+00> : vector<8x128xf32>
    %119 = tpu.matmul %116, %14, %cst_33 {dimension_numbers = #tpu.dot_dimension_numbers<[1], [0], [0], [1], [0, 0, 1, 1], [], []>} : vector<8x32xbf16>, vector<32x128xbf16>, vector<8x128xf32> -> vector<8x128xf32>
    %120 = arith.addf %118, %119 : vector<8x128xf32>
    %121 = arith.negf %120 : vector<8x128xf32>
    %122 = math.exp %121 : vector<8x128xf32>
    %cst_34 = arith.constant 1.000000e+00 : f32
    %123 = vector.broadcast %cst_34 : f32 to vector<8x128xf32>
    %124 = arith.addf %123, %122 : vector<8x128xf32>
    %125 = arith.divf %123, %124 : vector<8x128xf32>
    %126 = math.tanh %120 : vector<8x128xf32>
    %127 = vector.extract_strided_slice %125 {offsets = [0, 0], sizes = [8, 32], strides = [1, 1]} : vector<8x128xf32> to vector<8x32xf32>
    %128 = vector.extract_strided_slice %125 {offsets = [0, 32], sizes = [8, 32], strides = [1, 1]} : vector<8x128xf32> to vector<8x32xf32>
    %129 = vector.extract_strided_slice %126 {offsets = [0, 64], sizes = [8, 32], strides = [1, 1]} : vector<8x128xf32> to vector<8x32xf32>
    %130 = vector.extract_strided_slice %125 {offsets = [0, 96], sizes = [8, 32], strides = [1, 1]} : vector<8x128xf32> to vector<8x32xf32>
    %131 = arith.mulf %128, %113 : vector<8x32xf32>
    %132 = arith.mulf %127, %129 : vector<8x32xf32>
    %133 = arith.addf %131, %132 : vector<8x32xf32>
    %134 = math.tanh %133 : vector<8x32xf32>
    %135 = arith.mulf %130, %134 : vector<8x32xf32>
    %136 = arith.truncf %135 : vector<8x32xf32> to vector<8x32xbf16>
    %c40 = arith.constant 40 : index
    %c0_35 = arith.constant 0 : index
    %137 = vector.load %arg13[%c40, %c0_35] : memref<64x32xbf16, #tpu.memory_space<vmem>>, vector<8x32xbf16>
    tpu.vector_store %arg13[%c40, %c0_35], %136 {strides = array<i32>} : memref<64x32xbf16, #tpu.memory_space<vmem>>, vector<8x32xbf16>,
    %138 = vector.extract_strided_slice %13 {offsets = [48, 0], sizes = [8, 128], strides = [1, 1]} : vector<64x128xf32> to vector<8x128xf32>
    %cst_36 = arith.constant dense<0.000000e+00> : vector<8x128xf32>
    %139 = tpu.matmul %136, %14, %cst_36 {dimension_numbers = #tpu.dot_dimension_numbers<[1], [0], [0], [1], [0, 0, 1, 1], [], []>} : vector<8x32xbf16>, vector<32x128xbf16>, vector<8x128xf32> -> vector<8x128xf32>
    %140 = arith.addf %138, %139 : vector<8x128xf32>
    %141 = arith.negf %140 : vector<8x128xf32>
    %142 = math.exp %141 : vector<8x128xf32>
    %cst_37 = arith.constant 1.000000e+00 : f32
    %143 = vector.broadcast %cst_37 : f32 to vector<8x128xf32>
    %144 = arith.addf %143, %142 : vector<8x128xf32>
    %145 = arith.divf %143, %144 : vector<8x128xf32>
    %146 = math.tanh %140 : vector<8x128xf32>
    %147 = vector.extract_strided_slice %145 {offsets = [0, 0], sizes = [8, 32], strides = [1, 1]} : vector<8x128xf32> to vector<8x32xf32>
    %148 = vector.extract_strided_slice %145 {offsets = [0, 32], sizes = [8, 32], strides = [1, 1]} : vector<8x128xf32> to vector<8x32xf32>
    %149 = vector.extract_strided_slice %146 {offsets = [0, 64], sizes = [8, 32], strides = [1, 1]} : vector<8x128xf32> to vector<8x32xf32>
    %150 = vector.extract_strided_slice %145 {offsets = [0, 96], sizes = [8, 32], strides = [1, 1]} : vector<8x128xf32> to vector<8x32xf32>
    %151 = arith.mulf %148, %133 : vector<8x32xf32>
    %152 = arith.mulf %147, %149 : vector<8x32xf32>
    %153 = arith.addf %151, %152 : vector<8x32xf32>
    %154 = math.tanh %153 : vector<8x32xf32>
    %155 = arith.mulf %150, %154 : vector<8x32xf32>
    %156 = arith.truncf %155 : vector<8x32xf32> to vector<8x32xbf16>
    %c48 = arith.constant 48 : index
    %c0_38 = arith.constant 0 : index
    %157 = vector.load %arg13[%c48, %c0_38] : memref<64x32xbf16, #tpu.memory_space<vmem>>, vector<8x32xbf16>
    tpu.vector_store %arg13[%c48, %c0_38], %156 {strides = array<i32>} : memref<64x32xbf16, #tpu.memory_space<vmem>>, vector<8x32xbf16>,
    %158 = vector.extract_strided_slice %13 {offsets = [56, 0], sizes = [8, 128], strides = [1, 1]} : vector<64x128xf32> to vector<8x128xf32>
    %cst_39 = arith.constant dense<0.000000e+00> : vector<8x128xf32>
    %159 = tpu.matmul %156, %14, %cst_39 {dimension_numbers = #tpu.dot_dimension_numbers<[1], [0], [0], [1], [0, 0, 1, 1], [], []>} : vector<8x32xbf16>, vector<32x128xbf16>, vector<8x128xf32> -> vector<8x128xf32>
    %160 = arith.addf %158, %159 : vector<8x128xf32>
    %161 = arith.negf %160 : vector<8x128xf32>
    %162 = math.exp %161 : vector<8x128xf32>
    %cst_40 = arith.constant 1.000000e+00 : f32
    %163 = vector.broadcast %cst_40 : f32 to vector<8x128xf32>
    %164 = arith.addf %163, %162 : vector<8x128xf32>
    %165 = arith.divf %163, %164 : vector<8x128xf32>
    %166 = math.tanh %160 : vector<8x128xf32>
    %167 = vector.extract_strided_slice %165 {offsets = [0, 0], sizes = [8, 32], strides = [1, 1]} : vector<8x128xf32> to vector<8x32xf32>
    %168 = vector.extract_strided_slice %165 {offsets = [0, 32], sizes = [8, 32], strides = [1, 1]} : vector<8x128xf32> to vector<8x32xf32>
    %169 = vector.extract_strided_slice %166 {offsets = [0, 64], sizes = [8, 32], strides = [1, 1]} : vector<8x128xf32> to vector<8x32xf32>
    %170 = vector.extract_strided_slice %165 {offsets = [0, 96], sizes = [8, 32], strides = [1, 1]} : vector<8x128xf32> to vector<8x32xf32>
    %171 = arith.mulf %168, %153 : vector<8x32xf32>
    %172 = arith.mulf %167, %169 : vector<8x32xf32>
    %173 = arith.addf %171, %172 : vector<8x32xf32>
    %174 = math.tanh %173 : vector<8x32xf32>
    %175 = arith.mulf %170, %174 : vector<8x32xf32>
    %176 = arith.truncf %175 : vector<8x32xf32> to vector<8x32xbf16>
    %c56 = arith.constant 56 : index
    %c0_41 = arith.constant 0 : index
    %177 = vector.load %arg13[%c56, %c0_41] : memref<64x32xbf16, #tpu.memory_space<vmem>>, vector<8x32xbf16>
    tpu.vector_store %arg13[%c56, %c0_41], %176 {strides = array<i32>} : memref<64x32xbf16, #tpu.memory_space<vmem>>, vector<8x32xbf16>,
    %c0_42 = arith.constant 0 : index
    %c0_43 = arith.constant 0 : index
    %178 = vector.load %arg13[%c0_42, %c0_43] : memref<64x32xbf16, #tpu.memory_space<vmem>>, vector<64x32xbf16>
    %c0_44 = arith.constant 0 : index
    %c0_45 = arith.constant 0 : index
    %179 = vector.load %arg8[%c0_44, %c0_45] : memref<32x128xbf16, #tpu.memory_space<vmem>>, vector<32x128xbf16>
    %cst_46 = arith.constant dense<0.000000e+00> : vector<64x128xf32>
    %180 = tpu.matmul %178, %179, %cst_46 {dimension_numbers = #tpu.dot_dimension_numbers<[1], [0], [0], [1], [0, 0, 1, 1], [], []>} : vector<64x32xbf16>, vector<32x128xbf16>, vector<64x128xf32> -> vector<64x128xf32>
    %c0_47 = arith.constant 0 : index
    %c0_48 = arith.constant 0 : index
    %181 = vector.load %arg9[%c0_47, %c0_48] : memref<1x128xf32, #tpu.memory_space<vmem>>, vector<1x128xf32>
    %182 = vector.broadcast %181 : vector<1x128xf32> to vector<64x128xf32>
    %183 = arith.addf %180, %182 : vector<64x128xf32>
    %c0_49 = arith.constant 0 : index
    %c0_50 = arith.constant 0 : index
    %184 = vector.load %arg10[%c0_49, %c0_50] : memref<64x128xf32, #tpu.memory_space<vmem>>, vector<64x128xf32>
    tpu.vector_store %arg10[%c0_49, %c0_50], %183 {strides = array<i32>} : memref<64x128xf32, #tpu.memory_space<vmem>>, vector<64x128xf32>,
    %c0_51 = arith.constant 0 : index
    %c0_52 = arith.constant 0 : index
    %185 = vector.load %arg11[%c0_51, %c0_52] : memref<8x32xf32, #tpu.memory_space<vmem>>, vector<8x32xf32>
    tpu.vector_store %arg11[%c0_51, %c0_52], %175 {strides = array<i32>} : memref<8x32xf32, #tpu.memory_space<vmem>>, vector<8x32xf32>,
    %c0_53 = arith.constant 0 : index
    %c0_54 = arith.constant 0 : index
    %186 = vector.load %arg12[%c0_53, %c0_54] : memref<8x32xf32, #tpu.memory_space<vmem>>, vector<8x32xf32>
    tpu.vector_store %arg12[%c0_53, %c0_54], %173 {strides = array<i32>} : memref<8x32xf32, #tpu.memory_space<vmem>>, vector<8x32xf32>,
    return
  }
}

</mosaic_0001>

<bundles_post_ra>
// kernel: model_forward.1
= control target key start
LH: loop header
LB: loop body
LE: loop exit
PB: predicated region body
PF: predicated region fallthrough
CT: control target
= control target key end

     0   :  { %v1727_v56 = vmov 0.0   ;;  %vm1728_vm0 = vmmov 0   ;;  %v81_v59 = vlaneseq  ;;  %vm607_vm1 = vcmask 261120   ;;  %s1730_s30 = smov 32   ;;  %s2162_s1 = inlined_call_operand.vmem [shape: bf16[256,256], index: 1, kind: input, shape index: {}]   ;;  %s2163_s0 = inlined_call_operand.vmem [shape: bf16[64,256], index: 0, kind: input, shape index: {}]   ;;  %s2164_s3 = inlined_call_operand.vmem [shape: bf16[256,128], index: 3, kind: input, shape index: {}]   ;;  %s2165_s4 = inlined_call_operand.vmem [shape: bf16[32,128], index: 4, kind: input, shape index: {}]   ;;  %s2166_s2 = inlined_call_operand.vmem [shape: f32[1,256], index: 2, kind: input, shape index: {}]   ;;  %s2167_s6 = inlined_call_operand.vmem [shape: f32[8,32], index: 6, kind: input, shape index: {}]   ;;  %s2168_s5 = inlined_call_operand.vmem [shape: f32[1,128], index: 5, kind: input, shape index: {}]   ;;  %s2169_s7 = inlined_call_operand.vmem [shape: f32[8,32], index: 7, kind: input, shape index: {}]   ;;  %s2170_s8 = inlined_call_operand.vmem [shape: bf16[32,128], index: 8, kind: input, shape index: {}]   ;;  %s2171_s11 = inlined_call_operand.vmem [shape: f32[8,32], index: 11, kind: output, shape index: {1}]   ;;  %s2172_s12 = inlined_call_operand.vmem [shape: f32[8,32], index: 12, kind: output, shape index: {2}]   ;;  %s2173_s9 = inlined_call_operand.vmem [shape: f32[1,128], index: 9, kind: input, shape index: {}]   ;;  %s2174_s10 = inlined_call_operand.vmem [shape: f32[64,128], index: 10, kind: output, shape index: {0}]  }
   0x1   :  { %v1583_v0 = vld [vmem:[%s2162_s1 + $0x4] ss:$8 sps:$4 sm:$0xff]   ;;  %v1585_v1 = vld [vmem:[%s2162_s1] ss:$8 sps:$4 sm:$0xff]   ;;  %v1586_v2 = vld [vmem:[%s2162_s1 + $0x14] ss:$8 sps:$4 sm:$0xff]  }
   0x2   :  { %291 = vmatprep.subr.bf16.mxu0 %v1583_v0  ;;  %v1588_v3 = vld [vmem:[%s2162_s1 + $0x10] ss:$8 sps:$4 sm:$0xff]   ;;  %v1589_v4 = vld [vmem:[%s2162_s1 + $0x24] ss:$8 sps:$4 sm:$0xff]   ;;  %v1591_v5 = vld [vmem:[%s2162_s1 + $0x20] ss:$8 sps:$4 sm:$0xff]  }
   0x3   :  { %292 = vmatpush1.bf16.msra.mxu0 %v1585_v1  ;;  %v1592_v6 = vld [vmem:[%s2162_s1 + $0x34] ss:$8 sps:$4 sm:$0xff]   ;;  %v1594_v7 = vld [vmem:[%s2162_s1 + $0x30] ss:$8 sps:$4 sm:$0xff]   ;;  %v1595_v8 = vld [vmem:[%s2162_s1 + $0x44] ss:$8 sps:$4 sm:$0xff]  }
   0x4   :  { %293 = vmatprep.subr.bf16.mxu0 %v1586_v2  ;;  %v1597_v9 = vld [vmem:[%s2162_s1 + $0x40] ss:$8 sps:$4 sm:$0xff]   ;;  %v1598_v10 = vld [vmem:[%s2162_s1 + $0x54] ss:$8 sps:$4 sm:$0xff]   ;;  %v1600_v11 = vld [vmem:[%s2162_s1 + $0x50] ss:$8 sps:$4 sm:$0xff]  }
   0x5   :  { %v1601_v12 = vld [vmem:[%s2162_s1 + $0x64] ss:$8 sps:$4 sm:$0xff]   ;;  %v1603_v14 = vld [vmem:[%s2162_s1 + $0x60] ss:$8 sps:$4 sm:$0xff]   ;;  %v1604_v15 = vld [vmem:[%s2162_s1 + $0x74] ss:$8 sps:$4 sm:$0xff]  }
   0x6   :  { %v1633_v13 = vld [vmem:[%s2163_s0 + $0x4] ss:$8 sps:$4 sm:$0xff]   ;;  %v1606_v16 = vld [vmem:[%s2162_s1 + $0x70] ss:$8 sps:$4 sm:$0xff]   ;;  %v1609_v20 = vld [vmem:[%s2162_s1 + $0x80] ss:$8 sps:$4 sm:$0xff]  }
   0x7   :  { %294 = vmatpush1.bf16.msra.mxu0 %v1588_v3  ;;  %323 = vmatprep.mubr.bf16.mxu0 %v1633_v13  ;;  %v1607_v17 = vld [vmem:[%s2162_s1 + $0x84] ss:$8 sps:$4 sm:$0xff]   ;;  %v1647_v23 = vld [vmem:[%s2164_s3 + $0x50] sm:$0xff]   ;;  %v1649_v27 = vld [vmem:[%s2164_s3 + $0x58] sm:$0xff]   ;;  %v82_v60 = vshrl.u32 %v81_v59, 7  ;;  %vm685_vm2 = vcmask 257024  }
   0x8   :  { %295 = vmatprep.subr.bf16.mxu0 %v1589_v4  ;;  %v1643_v18 = vld [vmem:[%s2164_s3 + $0x40] sm:$0xff]   ;;  %v1645_v21 = vld [vmem:[%s2164_s3 + $0x48] sm:$0xff]   ;;  %v1610_v24 = vld [vmem:[%s2162_s1 + $0x94] ss:$8 sps:$4 sm:$0xff]   ;;  %vm761_vm3 = vcmask 261124  }
   0x9   :  { %v1644_v19 = vld [vmem:[%s2164_s3] sm:$0xff]   ;;  %1432 = vmatprep.subr.bf16.mxu1 %v1643_v18  ;;  %v1646_v22 = vld [vmem:[%s2164_s3 + $0x8] sm:$0xff]   ;;  %v1612_v25 = vld [vmem:[%s2162_s1 + $0x90] ss:$8 sps:$4 sm:$0xff]   ;;  %v83_v61 = vsub.s32 0, %v82_v60  ;;  %v87_v63 = vsub.s32 1, %v82_v60 }
   0xa   :  { %1433 = vmatpush3.bf16.msra.mxu1 %v1644_v19  ;;  %v1648_v26 = vld [vmem:[%s2164_s3 + $0x10] sm:$0xff]   ;;  %v1613_v28 = vld [vmem:[%s2162_s1 + $0xa4] ss:$8 sps:$4 sm:$0xff]   ;;  %v1615_v29 = vld [vmem:[%s2162_s1 + $0xa0] ss:$8 sps:$4 sm:$0xff]  }
   0xb   :  { %296 = vmatpush1.bf16.msra.mxu0 %v1591_v5  ;;  %1434 = vmatprep.subr.bf16.mxu1 %v1645_v21  ;;  %v1616_v30 = vld [vmem:[%s2162_s1 + $0xb4] ss:$8 sps:$4 sm:$0xff]   ;;  %v1651_v32 = vld [vmem:[%s2164_s3 + $0x60] sm:$0xff]   ;;  %v1618_v34 = vld [vmem:[%s2162_s1 + $0xb0] ss:$8 sps:$4 sm:$0xff]  }
   0xc   :  { %297 = vmatprep.subr.bf16.mxu0 %v1592_v6  ;;  %v1650_v31 = vld [vmem:[%s2164_s3 + $0x18] sm:$0xff]   ;;  %v1652_v33 = vld [vmem:[%s2164_s3 + $0x20] sm:$0xff]   ;;  %v1653_v35 = vld [vmem:[%s2164_s3 + $0x68] sm:$0xff]  }
   0xd   :  { %v1619_v36 = vld [vmem:[%s2162_s1 + $0xc4] ss:$8 sps:$4 sm:$0xff]   ;;  %v1621_v38 = vld [vmem:[%s2162_s1 + $0xc0] ss:$8 sps:$4 sm:$0xff]   ;;  %v1622_v39 = vld [vmem:[%s2162_s1 + $0xd4] ss:$8 sps:$4 sm:$0xff]  }
   0xe   :  { %1435 = vmatpush3.bf16.msra.mxu1 %v1646_v22  ;;  %v1654_v37 = vld [vmem:[%s2164_s3 + $0x28] sm:$0xff]   ;;  %v1624_v40 = vld [vmem:[%s2162_s1 + $0xd0] ss:$8 sps:$4 sm:$0xff]   ;;  %v1628_v43 = vld [vmem:[%s2162_s1 + $0xf4] ss:$8 sps:$4 sm:$0xff]  }
   0xf   :  { %298 = vmatpush1.bf16.msra.mxu0 %v1594_v7  ;;  %1436 = vmatprep.subr.bf16.mxu1 %v1647_v23  ;;  %v1625_v41 = vld [vmem:[%s2162_s1 + $0xe4] ss:$8 sps:$4 sm:$0xff]   ;;  %v1627_v42 = vld [vmem:[%s2162_s1 + $0xe0] ss:$8 sps:$4 sm:$0xff]   ;;  %v1630_v44 = vld [vmem:[%s2162_s1 + $0xf0] ss:$8 sps:$4 sm:$0xff]  }
  0x10   :  { %299 = vmatprep.subr.bf16.mxu0 %v1595_v8  ;;  %v1631_v45 = vld [vmem:[%s2163_s0] ss:$8 sps:$4 sm:$0xff]   ;;  %v1634_v46 = vld [vmem:[%s2163_s0 + $0x14] ss:$8 sps:$4 sm:$0xff]   ;;  %v1636_v47 = vld [vmem:[%s2163_s0 + $0x10] ss:$8 sps:$4 sm:$0xff]  }
  0x11   :  { %v1637_v48 = vld [vmem:[%s2163_s0 + $0x24] ss:$8 sps:$4 sm:$0xff]   ;;  %v1639_v49 = vld [vmem:[%s2163_s0 + $0x20] ss:$8 sps:$4 sm:$0xff]   ;;  %v1640_v50 = vld [vmem:[%s2163_s0 + $0x34] ss:$8 sps:$4 sm:$0xff]  }
  0x12   :  { %1437 = vmatpush3.bf16.msra.mxu1 %v1648_v26  ;;  %v1642_v51 = vld [vmem:[%s2163_s0 + $0x30] ss:$8 sps:$4 sm:$0xff]   ;;  %v1970_v57 = vld [vmem:[%s2165_s4] sm:$0xff]   ;;  %v1977_v58 = vld [vmem:[%s2165_s4 + $0x8] sm:$0xff]  }
  0x13   :  { %300 = vmatpush1.bf16.msra.mxu0 %v1597_v9  ;;  %1438 = vmatprep.subr.bf16.mxu1 %v1649_v27  ;;  %v1655_v52 = vld [vmem:[%s2164_s3 + $0x70] sm:$0xff]   ;;  %v1657_v54 = vld [vmem:[%s2164_s3 + $0x78] sm:$0xff]   ;;  %v79_v62 = vld [vmem:[%s2166_s2] sm:$0x3] }
  0x14   :  { %301 = vmatprep.subr.bf16.mxu0 %v1598_v10  ;;  %v1656_v53 = vld [vmem:[%s2164_s3 + $0x30] sm:$0xff]   ;;  %v1658_v55 = vld [vmem:[%s2164_s3 + $0x38] sm:$0xff]   ;;  %v84_v0 = vrot.slane %v79_v62, %v83_v61  ;;  %v88_v1 = vrot.slane %v79_v62, %v87_v63  ;;  %v592_v61 = vld [vmem:[%s2167_s6] sm:$0xff] }
  0x15   :  { %v594_v62 = vpack.c.bf16 %v592_v61, %v592_v61 }
  0x16   :  { %1439 = vmatpush3.bf16.msra.mxu1 %v1650_v31 }
  0x17   :  { %302 = vmatpush1.bf16.msra.mxu0 %v1600_v11  ;;  %1440 = vmatprep.subr.bf16.mxu1 %v1651_v32 }
  0x18   :  { %303 = vmatprep.subr.bf16.mxu0 %v1601_v12 }
  0x1a   :  { %1441 = vmatpush3.bf16.msra.mxu1 %v1652_v33 }
  0x1b   :  { %304 = vmatpush1.bf16.msra.mxu0 %v1603_v14  ;;  %1442 = vmatprep.subr.bf16.mxu1 %v1653_v35 }
  0x1c   :  { %305 = vmatprep.subr.bf16.mxu0 %v1604_v15 }
  0x1e   :  { %1443 = vmatpush3.bf16.msra.mxu1 %v1654_v37 }
  0x1f   :  { %306 = vmatpush1.bf16.msra.mxu0 %v1606_v16  ;;  %1444 = vmatprep.subr.bf16.mxu1 %v1655_v52 }
  0x20   :  { %307 = vmatprep.subr.bf16.mxu0 %v1607_v17 }
  0x22   :  { %1445 = vmatpush3.bf16.msra.mxu1 %v1656_v53 }
  0x23   :  { %308 = vmatpush1.bf16.msra.mxu0 %v1609_v20  ;;  %1446 = vmatprep.subr.bf16.mxu1 %v1657_v54 }
  0x24   :  { %309 = vmatprep.subr.bf16.mxu0 %v1610_v24 }
  0x26   :  { %1447 = vmatpush3.bf16.msra.mxu1 %v1658_v55 }
  0x27   :  { %310 = vmatpush1.bf16.msra.mxu0 %v1612_v25  ;;  %1502 = vmatprep.subr.bf16.mxu1 %v1727_v56 }
  0x28   :  { %311 = vmatprep.subr.bf16.mxu0 %v1613_v28 }
  0x2b   :  { %312 = vmatpush1.bf16.msra.mxu0 %v1615_v29 }
  0x2c   :  { %313 = vmatprep.subr.bf16.mxu0 %v1616_v30 }
  0x2f   :  { %314 = vmatpush1.bf16.msra.mxu0 %v1618_v34 }
  0x30   :  { %315 = vmatprep.subr.bf16.mxu0 %v1619_v36 }
  0x33   :  { %316 = vmatpush1.bf16.msra.mxu0 %v1621_v38 }
  0x34   :  { %317 = vmatprep.subr.bf16.mxu0 %v1622_v39 }
  0x37   :  { %318 = vmatpush1.bf16.msra.mxu0 %v1624_v40 }
  0x38   :  { %319 = vmatprep.subr.bf16.mxu0 %v1625_v41 }
  0x3b   :  { %320 = vmatpush1.bf16.msra.mxu0 %v1627_v42 }
  0x3c   :  { %321 = vmatprep.subr.bf16.mxu0 %v1628_v43 }
  0x3f   :  { %322 = vmatpush1.bf16.msra.mxu0 %v1630_v44 }
  0x40   :  { %1550 = vmatprep.subr.bf16.mxu0 %v1727_v56 }
  0x42   :  { %324 = vmatmul.mubr.bf16.vlgmr.msra.gmra.mrb[0].mxu0 %v1631_v45 }
  0x43   :  { %333 = vmatprep.mubr.bf16.mxu0 %v1634_v46  ;;  %1551 = vmatpush3.bf16.msra.mxu0 %v1970_v57 }
  0x44   :  { %1552 = vmatprep.subr.bf16.mxu0 %v1727_v56 }
  0x47   :  { %1553 = vmatpush3.bf16.msra.mxu0 %v1977_v58 }
  0x4a   :  { %334 = vmatmul.mubr.bf16.gmra.mrb[4].mxu0 %v1636_v47 }
  0x4b   :  { %343 = vmatprep.mubr.bf16.mxu0 %v1637_v48 }
  0x52   :  { %344 = vmatmul.mubr.bf16.gmra.mrb[8].mxu0 %v1639_v49 }
  0x53   :  { %353 = vmatprep.mubr.bf16.mxu0 %v1640_v50 }
  0x5a   :  { %354 = vmatmul.mubr.bf16.gmra.mrb[12].mxu0 %v1642_v51 }
  0x5b   :  { %1554 = vmatprep.mubr.msk.bf16.mxu0 %vm1728_vm0, %v1727_v56 }
 0x115   :  { %v325_v2 = vpop.f32.mrb[0].mxu0 }
 0x116   :  { %v326_v3 = vadd.f32 %v325_v2, %v84_v0  ;;  %v327_v4 = vpop.f32.mrb[1].mxu0 }
 0x117   :  { %v328_v5 = vadd.f32 %v327_v4, %v88_v1  ;;  %v329_v6 = vpop.f32.mrb[2].mxu0 }
 0x118   :  { %v330_v7 = vadd.f32 %v329_v6, %v84_v0  ;;  %v331_v8 = vpop.f32.mrb[3].mxu0  ;;  %v364_v10 = vmax.f32 %v326_v3, 0.0 }
 0x119   :  { %v332_v9 = vadd.f32 %v331_v8, %v88_v1  ;;  %v365_v12 = vmax.f32 %v328_v5, 0.0  ;;  %v1390_v5 = vld [vmem:[%s2168_s5] ss:$0 sm:$0xff]  ;;  %s1729_s5 = smov 64  }
 0x11a   :  { %v366_v11 = vmax.f32 %v330_v7, 0.0 }
 0x11b   :  { %v367_v13 = vmax.f32 %v332_v9, 0.0 }
 0x11c   :  { %v380_v14 = vpack.c.bf16 %v366_v11, %v364_v10 }
 0x11d   :  { %v335_v15 = vpop.f32.mrb[4].mxu0  ;;  %v381_v16 = vpack.c.bf16 %v367_v13, %v365_v12 }
 0x11e   :  { %v336_v17 = vadd.f32 %v335_v15, %v84_v0  ;;  %v337_v18 = vpop.f32.mrb[5].mxu0 }
 0x11f   :  { %v338_v19 = vadd.f32 %v337_v18, %v88_v1  ;;  %v339_v20 = vpop.f32.mrb[6].mxu0  ;;  %555 = vmatprep.mubr.bf16.mxu1 %v381_v16 }
 0x120   :  { %v340_v21 = vadd.f32 %v339_v20, %v84_v0  ;;  %v341_v22 = vpop.f32.mrb[7].mxu0  ;;  %556 = vmatmul.mubr.bf16.vlgmr.msra.gmra.mrb[0].mxu1 %v380_v14  ;;  %v368_v24 = vmax.f32 %v336_v17, 0.0 }
 0x121   :  { %v342_v23 = vadd.f32 %v341_v22, %v88_v1  ;;  %1503 = vmatpush3.bf16.msra.mxu1 %v1970_v57  ;;  %v369_v26 = vmax.f32 %v338_v19, 0.0 }
 0x122   :  { %v370_v25 = vmax.f32 %v340_v21, 0.0  ;;  %1504 = vmatprep.subr.bf16.mxu1 %v1727_v56 }
 0x123   :  { %v371_v27 = vmax.f32 %v342_v23, 0.0 }
 0x124   :  { %v382_v28 = vpack.c.bf16 %v370_v25, %v368_v24 }
 0x125   :  { %v383_v29 = vpack.c.bf16 %v371_v27, %v369_v26  ;;  %v345_v30 = vpop.f32.mrb[8].mxu0  ;;  %1505 = vmatpush3.bf16.msra.mxu1 %v1977_v58 }
 0x126   :  { %v346_v31 = vadd.f32 %v345_v30, %v84_v0  ;;  %v347_v32 = vpop.f32.mrb[9].mxu0  ;;  %1510 = vmatprep.subr.bf16.mxu1 %v1727_v56 }
 0x127   :  { %v348_v33 = vadd.f32 %v347_v32, %v88_v1  ;;  %v349_v34 = vpop.f32.mrb[10].mxu0  ;;  %563 = vmatprep.mubr.bf16.mxu1 %v383_v29 }
 0x128   :  { %v350_v35 = vadd.f32 %v349_v34, %v84_v0  ;;  %v351_v36 = vpop.f32.mrb[11].mxu0  ;;  %564 = vmatmul.mubr.bf16.gmra.mrb[4].mxu1 %v382_v28  ;;  %v372_v38 = vmax.f32 %v346_v31, 0.0 }
 0x129   :  { %v352_v37 = vadd.f32 %v351_v36, %v88_v1  ;;  %v373_v40 = vmax.f32 %v348_v33, 0.0 }
 0x12a   :  { %v374_v39 = vmax.f32 %v350_v35, 0.0 }
 0x12b   :  { %v375_v41 = vmax.f32 %v352_v37, 0.0 }
 0x12c   :  { %v384_v42 = vpack.c.bf16 %v374_v39, %v372_v38  ;;  %v593_v38 = vld [vmem:[%s2169_s7] sm:$0xff] }
 0x12d   :  { %v385_v43 = vpack.c.bf16 %v375_v41, %v373_v40  ;;  %v355_v44 = vpop.f32.mrb[12].mxu0 }
 0x12e   :  { %v356_v45 = vadd.f32 %v355_v44, %v84_v0  ;;  %v357_v46 = vpop.f32.mrb[13].mxu0 }
 0x12f   :  { %v358_v47 = vadd.f32 %v357_v46, %v88_v1  ;;  %v359_v48 = vpop.f32.mrb[14].mxu0  ;;  %571 = vmatprep.mubr.bf16.mxu1 %v385_v43 }
 0x130   :  { %v360_v49 = vadd.f32 %v359_v48, %v84_v0  ;;  %v361_v50 = vpop.f32.mrb[15].mxu0  ;;  %572 = vmatmul.mubr.bf16.gmra.mrb[8].mxu1 %v384_v42  ;;  %v376_v52 = vmax.f32 %v356_v45, 0.0 }
 0x131   :  { %v362_v51 = vadd.f32 %v361_v50, %v88_v1  ;;  %v377_v54 = vmax.f32 %v358_v47, 0.0 }
 0x132   :  { %v378_v53 = vmax.f32 %v360_v49, 0.0 }
 0x133   :  { %v379_v55 = vmax.f32 %v362_v51, 0.0 }
 0x134   :  { %v386_v59 = vpack.c.bf16 %v378_v53, %v376_v52 }
 0x135   :  { %v387_v60 = vpack.c.bf16 %v379_v55, %v377_v54 }
 0x137   :  { %579 = vmatprep.mubr.bf16.mxu1 %v387_v60 }
 0x138   :  { %580 = vmatmul.mubr.bf16.gmra.mrb[12].mxu1 %v386_v59 }
 0x139   :  { %1506 = vmatprep.mubr.msk.bf16.mxu1 %vm1728_vm0, %v1727_v56 }
 0x140   :  { %1507 = vmatmul.mubr.msk.bf16.vlgmr.msra.gmra.mrb[16].mxu1 %vm607_vm1, %v594_v62 }
 0x141   :  { %1511 = vmatpush3.bf16.msra.mxu1 %v1970_v57  ;;  %1514 = vmatprep.mubr.msk.bf16.mxu1 %vm1728_vm0, %v1727_v56 }
 0x142   :  { %1512 = vmatprep.subr.bf16.mxu1 %v1727_v56 }
 0x145   :  { %1513 = vmatpush3.bf16.msra.mxu1 %v1977_v58 }
 0x146   :  { %1518 = vmatprep.subr.bf16.mxu1 %v1727_v56 }
 0x1f3   :  { %v1448_v63 = vpop.f32.mrb[0].mxu1 }
 0x1f4   :  { %v1449_v0 = vpop.f32.mrb[1].mxu1 }
 0x1f5   :  { %v1450_v1 = vadd.f32 %v1449_v0, %v1448_v63  ;;  %v1451_v2 = vpop.f32.mrb[2].mxu1 }
 0x1f6   :  { %v1452_v3 = vpop.f32.mrb[3].mxu1 }
 0x1f7   :  { %v1453_v4 = vadd.f32 %v1452_v3, %v1451_v2  ;;  %v558_v31 = vadd.f32 %v1450_v1, %v1390_v5 }
 0x1f9   :  { %v2004_v6 = vadd.f32 %v1453_v4, %v1390_v5 }
 0x1fb   :  { %v1454_v7 = vpop.f32.mrb[4].mxu1 }
 0x1fc   :  { %v1455_v8 = vpop.f32.mrb[5].mxu1 }
 0x1fd   :  { %v1456_v9 = vadd.f32 %v1455_v8, %v1454_v7  ;;  %v1457_v10 = vpop.f32.mrb[6].mxu1 }
 0x1fe   :  { %v1458_v11 = vpop.f32.mrb[7].mxu1 }
 0x1ff   :  { %v1459_v12 = vadd.f32 %v1458_v11, %v1457_v10  ;;  %v2006_v13 = vadd.f32 %v1456_v9, %v1390_v5 }
 0x201   :  { %v2008_v14 = vadd.f32 %v1459_v12, %v1390_v5 }
 0x203   :  { %v1460_v15 = vpop.f32.mrb[8].mxu1 }
 0x204   :  { %v1461_v16 = vpop.f32.mrb[9].mxu1 }
 0x205   :  { %v1462_v17 = vadd.f32 %v1461_v16, %v1460_v15  ;;  %v1463_v18 = vpop.f32.mrb[10].mxu1 }
 0x206   :  { %v1464_v19 = vpop.f32.mrb[11].mxu1 }
 0x207   :  { %v1465_v20 = vadd.f32 %v1464_v19, %v1463_v18  ;;  %v2010_v21 = vadd.f32 %v1462_v17, %v1390_v5 }
 0x209   :  { %v2012_v22 = vadd.f32 %v1465_v20, %v1390_v5 }
 0x20b   :  { %v1466_v23 = vpop.f32.mrb[12].mxu1 }
 0x20c   :  { %v1467_v24 = vpop.f32.mrb[13].mxu1 }
 0x20d   :  { %v1468_v25 = vadd.f32 %v1467_v24, %v1466_v23  ;;  %v1469_v26 = vpop.f32.mrb[14].mxu1 }
 0x20e   :  { %v1470_v27 = vpop.f32.mrb[15].mxu1 }
 0x20f   :  { %v1471_v28 = vadd.f32 %v1470_v27, %v1469_v26  ;;  %v2014_v29 = vadd.f32 %v1468_v25, %v1390_v5 }
 0x211   :  { %v2016_v30 = vadd.f32 %v1471_v28, %v1390_v5 }
 0x213   :  { %v645_v32 = vpop.f32.mrb[16].mxu1 }
 0x214   :  { %v651_v33 = vadd.f32 %v645_v32, %v558_v31  ;;  %v1508_v34 = vpop.f32.mrb[17].mxu1 }
 0x215   :  { %v648_v35 = vpop.f32.mrb[18].mxu1 }
 0x216   :  { %1663 = vtanh.f32 %v651_v33  ;;  %v1509_v36 = vpop.f32.mrb[19].mxu1  ;;  %v1410_v39 = vmul.f32 -1.442695, %v651_v33 }
 0x218   :  { %1665 = vpow2.f32 %v1410_v39 }
 0x220   :  { %v1664_v37 = vpop.eup %1663 }
 0x221   :  { %665 = vrot.lane.b32.xlu0 %v1664_v37, %s1729_s5 }
 0x222   :  { %v1666_v40 = vpop.eup %1665 }
 0x223   :  { %v655_v41 = vadd.f32 1.0, %v1666_v40 }
 0x225   :  { %660 = vrot.lane.b32.xlu0 %v593_v38, %s1730_s30  ;;  %1667 = vrcp.f32 %v655_v41 }
 0x22f   :  { %v1668_v42 = vpop.eup %1667 }
 0x293   :  { %v666_v43 = vpop.permute.xlu0 %665 }
 0x294   :  { %v668_v44 = vmul.f32 %v1668_v42, %v666_v43 }
 0x296   :  { %670 = vrot.lane.b32.xlu1 %v668_v44, %s1730_s30 }
 0x297   :  { %v661_v45 = vpop.permute.xlu0 %660 }
 0x298   :  { %v663_v46 = vmul.f32 %v1668_v42, %v661_v45 }
 0x308   :  { %v671_v47 = vpop.permute.xlu1 %670 }
 0x309   :  { %v673_v48 = vadd.f32 %v671_v47, %v663_v46 }
 0x30b   :  { %1669 = vtanh.f32 %v673_v48 }
 0x315   :  { %v1670_v49 = vpop.eup %1669 }
 0x316   :  { %676 = vrot.lane.b32.xlu1 %v1670_v49, %s1729_s5 }
 0x388   :  { %v677_v50 = vpop.permute.xlu1 %676 }
 0x389   :  { %v679_v51 = vmul.f32 %v1668_v42, %v677_v50 }
 0x38b   :  { %v680_v52 = vpack.c.bf16 %v679_v51, %v679_v51 }
 0x38d   :  { %682 = vrot.lane.b32.xlu0 %v680_v52, %s1730_s30 }
 0x3ff   :  { %v683_v53 = vpop.permute.xlu0 %682 }
 0x400   :  { %686 = vst.msk [vmem:[#allocation2] sm:$0xf] %vm685_vm2, %v683_v53  ;;  %1515 = vmatmul.mubr.msk.bf16.vlgmr.msra.gmra.mrb[20].mxu1 %vm607_vm1, %v683_v53 }
 0x401   :  { %1519 = vmatpush3.bf16.msra.mxu1 %v1970_v57  ;;  %1522 = vmatprep.mubr.msk.bf16.mxu1 %vm1728_vm0, %v1727_v56 }
 0x402   :  { %1520 = vmatprep.subr.bf16.mxu1 %v1727_v56 }
 0x405   :  { %1521 = vmatpush3.bf16.msra.mxu1 %v1977_v58 }
 0x406   :  { %1526 = vmatprep.subr.bf16.mxu1 %v1727_v56 }
 0x4d3   :  { %v724_v54 = vpop.f32.mrb[20].mxu1 }
 0x4d4   :  { %v730_v55 = vadd.f32 %v724_v54, %v2004_v6  ;;  %v1516_v59 = vpop.f32.mrb[21].mxu1 }
 0x4d5   :  { %v727_v60 = vpop.f32.mrb[22].mxu1 }
 0x4d6   :  { %1671 = vtanh.f32 %v730_v55  ;;  %v1517_v61 = vpop.f32.mrb[23].mxu1  ;;  %v1412_v63 = vmul.f32 -1.442695, %v730_v55 }
 0x4d8   :  { %1673 = vpow2.f32 %v1412_v63 }
 0x4e0   :  { %v1672_v62 = vpop.eup %1671 }
 0x4e1   :  { %740 = vrot.lane.b32.xlu1 %v1672_v62, %s1729_s5 }
 0x4e2   :  { %v1674_v0 = vpop.eup %1673 }
 0x4e3   :  { %v734_v1 = vadd.f32 1.0, %v1674_v0 }
 0x4e5   :  { %1675 = vrcp.f32 %v734_v1 }
 0x4ef   :  { %v1676_v2 = vpop.eup %1675 }
 0x4f0   :  { %v738_v5 = vmul.f32 %v1676_v2, %v673_v48 }
 0x553   :  { %v741_v3 = vpop.permute.xlu1 %740 }
 0x554   :  { %v743_v4 = vmul.f32 %v1676_v2, %v741_v3 }
 0x556   :  { %745 = vrot.lane.b32.xlu0 %v743_v4, %s1730_s30 }
 0x5c8   :  { %v746_v7 = vpop.permute.xlu0 %745 }
 0x5c9   :  { %v748_v6 = vadd.f32 %v746_v7, %v738_v5 }
 0x5cb   :  { %1677 = vtanh.f32 %v748_v6 }
 0x5d5   :  { %v1678_v8 = vpop.eup %1677 }
 0x5d6   :  { %751 = vrot.lane.b32.xlu1 %v1678_v8, %s1729_s5 }
 0x648   :  { %v752_v9 = vpop.permute.xlu1 %751 }
 0x649   :  { %v754_v10 = vmul.f32 %v1676_v2, %v752_v9 }
 0x64b   :  { %v2038_v11 = vpack.c.bf16 %v754_v10, %v754_v10 }
 0x64d   :  { %763 = vrot.lane.b32.xlu0 %v2038_v11, %s1730_s30 }
 0x6bf   :  { %v764_v12 = vpop.permute.xlu0 %763 }
 0x6c0   :  { %1523 = vmatmul.mubr.msk.bf16.vlgmr.msra.gmra.mrb[24].mxu1 %vm607_vm1, %v764_v12 }
 0x6c1   :  { %1527 = vmatpush3.bf16.msra.mxu1 %v1970_v57  ;;  %1530 = vmatprep.mubr.msk.bf16.mxu1 %vm1728_vm0, %v1727_v56 }
 0x6c2   :  { %1528 = vmatprep.subr.bf16.mxu1 %v1727_v56 }
 0x6c5   :  { %1529 = vmatpush3.bf16.msra.mxu1 %v1977_v58 }
 0x6c6   :  { %1534 = vmatprep.subr.bf16.mxu1 %v1727_v56 }
 0x793   :  { %v802_v15 = vpop.f32.mrb[24].mxu1 }
 0x794   :  { %v808_v16 = vadd.f32 %v802_v15, %v2006_v13  ;;  %v1524_v17 = vpop.f32.mrb[25].mxu1 }
 0x795   :  { %v805_v18 = vpop.f32.mrb[26].mxu1 }
 0x796   :  { %1679 = vtanh.f32 %v808_v16  ;;  %v1525_v19 = vpop.f32.mrb[27].mxu1  ;;  %v1414_v23 = vmul.f32 -1.442695, %v808_v16 }
 0x798   :  { %1681 = vpow2.f32 %v1414_v23 }
 0x7a0   :  { %v1680_v20 = vpop.eup %1679 }
 0x7a1   :  { %818 = vrot.lane.b32.xlu1 %v1680_v20, %s1729_s5 }
 0x7a2   :  { %v1682_v24 = vpop.eup %1681 }
 0x7a3   :  { %v812_v25 = vadd.f32 1.0, %v1682_v24 }
 0x7a5   :  { %1683 = vrcp.f32 %v812_v25 }
 0x7af   :  { %v1684_v26 = vpop.eup %1683 }
 0x7b0   :  { %v816_v31 = vmul.f32 %v1684_v26, %v748_v6 }
 0x813   :  { %v819_v27 = vpop.permute.xlu1 %818 }
 0x814   :  { %v821_v28 = vmul.f32 %v1684_v26, %v819_v27 }
 0x816   :  { %823 = vrot.lane.b32.xlu0 %v821_v28, %s1730_s30 }
 0x888   :  { %v824_v32 = vpop.permute.xlu0 %823 }
 0x889   :  { %v826_v13 = vadd.f32 %v824_v32, %v816_v31 }
 0x88b   :  { %1685 = vtanh.f32 %v826_v13 }
 0x895   :  { %v1686_v33 = vpop.eup %1685 }
 0x896   :  { %829 = vrot.lane.b32.xlu1 %v1686_v33, %s1729_s5 }
 0x908   :  { %v830_v34 = vpop.permute.xlu1 %829 }
 0x909   :  { %v832_v35 = vmul.f32 %v1684_v26, %v830_v34 }
 0x90b   :  { %v833_v36 = vpack.c.bf16 %v832_v35, %v832_v35 }
 0x90d   :  { %835 = vrot.lane.b32.xlu0 %v833_v36, %s1730_s30 }
 0x97f   :  { %v836_v37 = vpop.permute.xlu0 %835 }
 0x980   :  { %838 = vst.msk [vmem:[#allocation2 + $0x8] sm:$0xf] %vm685_vm2, %v836_v37  ;;  %1531 = vmatmul.mubr.msk.bf16.vlgmr.msra.gmra.mrb[28].mxu1 %vm607_vm1, %v836_v37 }
 0x981   :  { %1535 = vmatpush3.bf16.msra.mxu1 %v1970_v57  ;;  %1538 = vmatprep.mubr.msk.bf16.mxu1 %vm1728_vm0, %v1727_v56 }
 0x982   :  { %1536 = vmatprep.subr.bf16.mxu1 %v1727_v56 }
 0x985   :  { %1537 = vmatpush3.bf16.msra.mxu1 %v1977_v58 }
 0x986   :  { %1542 = vmatprep.subr.bf16.mxu1 %v1727_v56 }
 0xa53   :  { %v876_v38 = vpop.f32.mrb[28].mxu1 }
 0xa54   :  { %v882_v39 = vadd.f32 %v876_v38, %v2008_v14  ;;  %v1532_v40 = vpop.f32.mrb[29].mxu1 }
 0xa55   :  { %v879_v41 = vpop.f32.mrb[30].mxu1 }
 0xa56   :  { %1687 = vtanh.f32 %v882_v39  ;;  %v1533_v42 = vpop.f32.mrb[31].mxu1  ;;  %v1416_v44 = vmul.f32 -1.442695, %v882_v39 }
 0xa58   :  { %1689 = vpow2.f32 %v1416_v44 }
 0xa60   :  { %v1688_v43 = vpop.eup %1687 }
 0xa61   :  { %892 = vrot.lane.b32.xlu1 %v1688_v43, %s1729_s5 }
 0xa62   :  { %v1690_v45 = vpop.eup %1689 }
 0xa63   :  { %v886_v46 = vadd.f32 1.0, %v1690_v45 }
 0xa65   :  { %1691 = vrcp.f32 %v886_v46 }
 0xa6f   :  { %v1692_v47 = vpop.eup %1691 }
 0xa70   :  { %v890_v50 = vmul.f32 %v1692_v47, %v826_v13 }
 0xad3   :  { %v893_v48 = vpop.permute.xlu1 %892 }
 0xad4   :  { %v895_v49 = vmul.f32 %v1692_v47, %v893_v48 }
 0xad6   :  { %897 = vrot.lane.b32.xlu0 %v895_v49, %s1730_s30 }
 0xb48   :  { %v898_v51 = vpop.permute.xlu0 %897 }
 0xb49   :  { %v900_v14 = vadd.f32 %v898_v51, %v890_v50 }
 0xb4b   :  { %1693 = vtanh.f32 %v900_v14 }
 0xb55   :  { %v1694_v52 = vpop.eup %1693 }
 0xb56   :  { %903 = vrot.lane.b32.xlu1 %v1694_v52, %s1729_s5 }
 0xbc8   :  { %v904_v53 = vpop.permute.xlu1 %903 }
 0xbc9   :  { %v906_v54 = vmul.f32 %v1692_v47, %v904_v53 }
 0xbcb   :  { %v2066_v55 = vpack.c.bf16 %v906_v54, %v906_v54 }
 0xbcd   :  { %914 = vrot.lane.b32.xlu0 %v2066_v55, %s1730_s30 }
 0xc3f   :  { %v915_v59 = vpop.permute.xlu0 %914 }
 0xc40   :  { %1539 = vmatmul.mubr.msk.bf16.vlgmr.msra.gmra.mrb[32].mxu1 %vm607_vm1, %v915_v59 }
 0xc41   :  { %1543 = vmatpush3.bf16.msra.mxu1 %v1970_v57  ;;  %1546 = vmatprep.mubr.msk.bf16.mxu1 %vm1728_vm0, %v1727_v56 }
 0xc42   :  { %1544 = vmatprep.subr.bf16.mxu1 %v1727_v56 }
 0xc45   :  { %1545 = vmatpush3.bf16.msra.mxu1 %v1977_v58 }
 0xc46   :  { %1558 = vmatprep.subr.bf16.mxu1 %v1727_v56 }
 0xd13   :  { %v953_v60 = vpop.f32.mrb[32].mxu1 }
 0xd14   :  { %v959_v61 = vadd.f32 %v953_v60, %v2010_v21  ;;  %v1540_v62 = vpop.f32.mrb[33].mxu1 }
 0xd15   :  { %v956_v63 = vpop.f32.mrb[34].mxu1 }
 0xd16   :  { %1695 = vtanh.f32 %v959_v61  ;;  %v1541_v0 = vpop.f32.mrb[35].mxu1  ;;  %v1418_v2 = vmul.f32 -1.442695, %v959_v61 }
 0xd18   :  { %1697 = vpow2.f32 %v1418_v2 }
 0xd20   :  { %v1696_v1 = vpop.eup %1695 }
 0xd21   :  { %969 = vrot.lane.b32.xlu1 %v1696_v1, %s1729_s5 }
 0xd22   :  { %v1698_v3 = vpop.eup %1697 }
 0xd23   :  { %v963_v4 = vadd.f32 1.0, %v1698_v3 }
 0xd25   :  { %1699 = vrcp.f32 %v963_v4 }
 0xd2f   :  { %v1700_v5 = vpop.eup %1699 }
 0xd30   :  { %v967_v8 = vmul.f32 %v1700_v5, %v900_v14 }
 0xd93   :  { %v970_v7 = vpop.permute.xlu1 %969 }
 0xd94   :  { %v972_v6 = vmul.f32 %v1700_v5, %v970_v7 }
 0xd96   :  { %974 = vrot.lane.b32.xlu0 %v972_v6, %s1730_s30  ;;  %v757_v6 = vrot.slane %v2038_v11, 4  ;;  %v1662_v11 = vld [vmem:[%s2170_s8 + $0x8] sm:$0xff]  }
 0xe08   :  { %v975_v9 = vpop.permute.xlu0 %974 }
 0xe09   :  { %v977_v21 = vadd.f32 %v975_v9, %v967_v8 }
 0xe0b   :  { %1701 = vtanh.f32 %v977_v21 }
 0xe15   :  { %v1702_v10 = vpop.eup %1701 }
 0xe16   :  { %980 = vrot.lane.b32.xlu1 %v1702_v10, %s1729_s5  ;;  %v1661_v10 = vld [vmem:[%s2170_s8] sm:$0xff]   ;;  %s1731_s8 = smov 96  }
 0xe17   :  { %1566 = vmatprep.subr.bf16.mxu0 %v1661_v10 }
 0xe88   :  { %v981_v12 = vpop.permute.xlu1 %980 }
 0xe89   :  { %v983_v15 = vmul.f32 %v1700_v5, %v981_v12 }
 0xe8b   :  { %v984_v16 = vpack.c.bf16 %v983_v15, %v983_v15 }
 0xe8d   :  { %986 = vrot.lane.b32.xlu0 %v984_v16, %s1730_s30 }
 0xeff   :  { %v987_v17 = vpop.permute.xlu0 %986 }
 0xf00   :  { %989 = vst.msk [vmem:[#allocation2 + $0x10] sm:$0xf] %vm685_vm2, %v987_v17  ;;  %1547 = vmatmul.mubr.msk.bf16.vlgmr.msra.gmra.mrb[36].mxu1 %vm607_vm1, %v987_v17 }
 0xf01   :  { %1559 = vmatpush3.bf16.msra.mxu1 %v1970_v57  ;;  %1562 = vmatprep.mubr.msk.bf16.mxu1 %vm1728_vm0, %v1727_v56 }
 0xf02   :  { %1560 = vmatprep.subr.bf16.mxu1 %v1727_v56 }
 0xf05   :  { %1561 = vmatpush3.bf16.msra.mxu1 %v1977_v58 }
 0xfd3   :  { %v1027_v18 = vpop.f32.mrb[36].mxu1 }
 0xfd4   :  { %v1033_v19 = vadd.f32 %v1027_v18, %v2012_v22  ;;  %v1548_v20 = vpop.f32.mrb[37].mxu1  ;;  %v909_v18 = vrot.slane %v2066_v55, 4 }
 0xfd5   :  { %v1030_v23 = vpop.f32.mrb[38].mxu1 }
 0xfd6   :  { %1703 = vtanh.f32 %v1033_v19  ;;  %v1549_v24 = vpop.f32.mrb[39].mxu1  ;;  %v1420_v26 = vmul.f32 -1.442695, %v1033_v19 }
 0xfd8   :  { %1705 = vpow2.f32 %v1420_v26 }
 0xfe0   :  { %v1704_v25 = vpop.eup %1703 }
 0xfe1   :  { %1043 = vrot.lane.b32.xlu1 %v1704_v25, %s1729_s5 }
 0xfe2   :  { %v1706_v57 = vpop.eup %1705 }
 0xfe3   :  { %v1037_v27 = vadd.f32 1.0, %v1706_v57 }
 0xfe5   :  { %1707 = vrcp.f32 %v1037_v27 }
 0xfef   :  { %v1708_v28 = vpop.eup %1707 }
 0xff0   :  { %v1041_v58 = vmul.f32 %v1708_v28, %v977_v21 }
0x1053   :  { %v1044_v31 = vpop.permute.xlu1 %1043 }
0x1054   :  { %v1046_v56 = vmul.f32 %v1708_v28, %v1044_v31 }
0x1056   :  { %1048 = vrot.lane.b32.xlu0 %v1046_v56, %s1730_s30  ;;  %v1425_v56 = vld [vmem:[%s2173_s9] ss:$0 sm:$0xff] }
0x10c8   :  { %v1049_v32 = vpop.permute.xlu0 %1048 }
0x10c9   :  { %v1051_v22 = vadd.f32 %v1049_v32, %v1041_v58 }
0x10cb   :  { %1709 = vtanh.f32 %v1051_v22 }
0x10d5   :  { %v1710_v13 = vpop.eup %1709 }
0x10d6   :  { %1054 = vrot.lane.b32.xlu1 %v1710_v13, %s1729_s5 }
0x1148   :  { %v1055_v33 = vpop.permute.xlu1 %1054 }
0x1149   :  { %v1057_v34 = vmul.f32 %v1708_v28, %v1055_v33 }
0x114b   :  { %v1058_v35 = vpack.c.bf16 %v1057_v34, %v1057_v34 }
0x114d   :  { %1065 = vrot.lane.b32.xlu0 %v1058_v35, %s1730_s30 }
0x11bf   :  { %v1066_v36 = vpop.permute.xlu0 %1065 }
0x11c0   :  { %1555 = vmatmul.mubr.msk.bf16.vlgmr.msra.gmra.mrb[16].mxu0 %vm607_vm1, %v1066_v36 }
0x11c1   :  { %1567 = vmatpush3.bf16.msra.mxu0 %v1661_v10 }
0x11c2   :  { %1568 = vmatprep.subr.bf16.mxu0 %v1662_v11 }
0x11c5   :  { %1569 = vmatpush3.bf16.msra.mxu0 %v1662_v11 }
0x1293   :  { %v1104_v37 = vpop.f32.mrb[16].mxu0 }
0x1294   :  { %v1110_v38 = vadd.f32 %v1104_v37, %v2014_v29  ;;  %v1556_v39 = vpop.f32.mrb[17].mxu0 }
0x1295   :  { %v1107_v40 = vpop.f32.mrb[18].mxu0 }
0x1296   :  { %1711 = vtanh.f32 %v1110_v38  ;;  %v1557_v41 = vpop.f32.mrb[19].mxu0  ;;  %v1422_v43 = vmul.f32 -1.442695, %v1110_v38 }
0x1298   :  { %1713 = vpow2.f32 %v1422_v43 }
0x12a0   :  { %v1712_v42 = vpop.eup %1711 }
0x12a1   :  { %1120 = vrot.lane.b32.xlu1 %v1712_v42, %s1729_s5 }
0x12a2   :  { %v1714_v44 = vpop.eup %1713 }
0x12a3   :  { %v1114_v45 = vadd.f32 1.0, %v1714_v44 }
0x12a5   :  { %1715 = vrcp.f32 %v1114_v45 }
0x12af   :  { %v1716_v46 = vpop.eup %1715 }
0x12b0   :  { %v1118_v49 = vmul.f32 %v1716_v46, %v1051_v22 }
0x1313   :  { %v1121_v47 = vpop.permute.xlu1 %1120 }
0x1314   :  { %v1123_v48 = vmul.f32 %v1716_v46, %v1121_v47 }
0x1316   :  { %1125 = vrot.lane.b32.xlu0 %v1123_v48, %s1730_s30 }
0x1388   :  { %v1126_v50 = vpop.permute.xlu0 %1125 }
0x1389   :  { %v1128_v29 = vadd.f32 %v1126_v50, %v1118_v49 }
0x138b   :  { %1717 = vtanh.f32 %v1128_v29 }
0x1395   :  { %v1718_v51 = vpop.eup %1717 }
0x1396   :  { %1131 = vrot.lane.b32.xlu1 %v1718_v51, %s1729_s5 }
0x1408   :  { %v1132_v14 = vpop.permute.xlu1 %1131 }
0x1409   :  { %v1134_v52 = vmul.f32 %v1716_v46, %v1132_v14 }
0x140b   :  { %v1135_v53 = vpack.c.bf16 %v1134_v52, %v1134_v52 }
0x140d   :  { %1137 = vrot.lane.b32.xlu0 %v1135_v53, %s1730_s30 }
0x147f   :  { %v1138_v54 = vpop.permute.xlu0 %1137 }
0x1480   :  { %1140 = vst.msk [vmem:[#allocation2 + $0x18] sm:$0xf] %vm685_vm2, %v1138_v54  ;;  %1563 = vmatmul.mubr.msk.bf16.vlgmr.msra.gmra.mrb[40].mxu1 %vm607_vm1, %v1138_v54 }
0x1553   :  { %v1178_v59 = vpop.f32.mrb[40].mxu1 }
0x1554   :  { %v1184_v60 = vadd.f32 %v1178_v59, %v2016_v30  ;;  %v1564_v61 = vpop.f32.mrb[41].mxu1  ;;  %v1060_v30 = vrot.slane %v1058_v35, 4 }
0x1555   :  { %v1181_v62 = vpop.f32.mrb[42].mxu1 }
0x1556   :  { %1719 = vtanh.f32 %v1184_v60  ;;  %v1565_v63 = vpop.f32.mrb[43].mxu1  ;;  %v1424_v1 = vmul.f32 -1.442695, %v1184_v60 }
0x1558   :  { %1721 = vpow2.f32 %v1424_v1 }
0x1560   :  { %v1720_v0 = vpop.eup %1719 }
0x1561   :  { %1194 = vrot.lane.b32.xlu1 %v1720_v0, %s1729_s5 }
0x1562   :  { %v1722_v2 = vpop.eup %1721 }
0x1563   :  { %v1188_v3 = vadd.f32 1.0, %v1722_v2 }
0x1565   :  { %1723 = vrcp.f32 %v1188_v3 }
0x156f   :  { %v1724_v4 = vpop.eup %1723 }
0x1570   :  { %v1192_v8 = vmul.f32 %v1724_v4, %v1128_v29 }
0x15d3   :  { %v1195_v5 = vpop.permute.xlu1 %1194 }
0x15d4   :  { %v1197_v7 = vmul.f32 %v1724_v4, %v1195_v5 }
0x15d6   :  { %1199 = vrot.lane.b32.xlu0 %v1197_v7, %s1730_s30 }
0x15da   :  { %758 = vrot.lane.b32.xlu0 %v757_v6, %s1730_s30 }
0x15de   :  { %1061 = vrot.lane.b32.xlu0 %v1060_v30, %s1730_s30 }
0x1648   :  { %v1200_v9 = vpop.permute.xlu0 %1199 }
0x1649   :  { %v1202_v21 = vadd.f32 %v1200_v9, %v1192_v8 }
0x164b   :  { %1725 = vtanh.f32 %v1202_v21 }
0x164c   :  { %v759_v12 = vpop.permute.xlu0 %758 }
0x164d   :  { %762 = vst.msk [vmem:[#allocation2] sm:$0xf0] %vm761_vm3, %v759_v12 }
0x1650   :  { %v1062_v15 = vpop.permute.xlu0 %1061 }
0x1651   :  { %1064 = vst.msk [vmem:[#allocation2 + $0x10] sm:$0xf0] %vm761_vm3, %v1062_v15 }
0x1654   :  { %v1216_v16 = vld [vmem:[#allocation2] sm:$0xff] }
0x1655   :  { %v1726_v17 = vpop.eup %1725  ;;  %1570 = vmatprep.mubr.msk.bf16.mxu0 %vm607_vm1, %v1216_v16 }
0x1656   :  { %1205 = vrot.lane.b32.xlu1 %v1726_v17, %s1729_s5 }
0x1658   :  { %v1218_v57 = vld [vmem:[#allocation2 + $0x10] sm:$0xff] }
0x165a   :  { %910 = vrot.lane.b32.xlu1 %v909_v18, %s1730_s30 }
0x16c8   :  { %v1206_v19 = vpop.permute.xlu1 %1205 }
0x16c9   :  { %v1208_v20 = vmul.f32 %v1724_v4, %v1206_v19 }
0x16cb   :  { %v1209_v23 = vpack.c.bf16 %v1208_v20, %v1208_v20  ;;  %1329 = vrot.lane.b32.xlu0 %v1208_v20, %s1730_s30 }
0x16cc   :  { %v911_v24 = vpop.permute.xlu1 %910 }
0x16cd   :  { %v1211_v25 = vrot.slane %v1209_v23, 4  ;;  %913 = vst.msk [vmem:[#allocation2 + $0x8] sm:$0xf0] %vm761_vm3, %v911_v24 }
0x16cf   :  { %1212 = vrot.lane.b32.xlu1 %v1211_v25, %s1730_s30 }
0x16d3   :  { %1334 = vrot.lane.b32.xlu1 %v1202_v21, %s1731_s8 }
0x16d4   :  { %v1217_v26 = vld [vmem:[#allocation2 + $0x8] sm:$0xff] }
0x16d5   :  { %1571 = vmatmul.mubr.msk.bf16.vlgmr.msra.gmra.mrb[20].mxu0 %vm607_vm1, %v1217_v26 }
0x16d6   :  { %1574 = vmatprep.mubr.msk.bf16.mxu0 %vm607_vm1, %v1218_v57 }
0x173d   :  { %v1330_v55 = vpop.permute.xlu0 %1329 }
0x173e   :  { %1332 = vst.msk [vmem:[%s2171_s11] sm:$0xff] %vm607_vm1, %v1330_v55 }
0x1741   :  { %v1213_v27 = vpop.permute.xlu1 %1212 }
0x1742   :  { %1215 = vst.msk [vmem:[#allocation2 + $0x18] sm:$0xf0] %vm761_vm3, %v1213_v27 }
0x1745   :  { %v1335_v28 = vpop.permute.xlu1 %1334 }
0x1746   :  { %1337 = vst.msk [vmem:[%s2172_s12] sm:$0xff] %vm607_vm1, %v1335_v28 }
0x1749   :  { %v1219_v31 = vld [vmem:[#allocation2 + $0x18] sm:$0xff] }
0x174a   :  { %1575 = vmatmul.mubr.msk.bf16.gmra.mrb[24].mxu0 %vm607_vm1, %v1219_v31 }
0x17a8   :  { %v1572_v58 = vpop.f32.mrb[20].mxu0 }
0x17a9   :  { %v1298_v32 = vadd.f32 %v1572_v58, %v1425_v56  ;;  %v1289_v22 = vpop.f32.mrb[21].mxu0 }
0x17aa   :  { %v1290_v13 = vadd.f32 %v1425_v56, %v1289_v22  ;;  %v1573_v33 = vpop.f32.mrb[22].mxu0 }
0x17ab   :  { %1322 = vst [vmem:[%s2174_s10 + $0x10] sm:$0xff] %v1298_v32  ;;  %v1301_v34 = vadd.f32 %v1573_v33, %v1425_v56  ;;  %v1292_v35 = vpop.f32.mrb[23].mxu0 }
0x17ac   :  { %1320 = vst [vmem:[%s2174_s10] sm:$0xff] %v1290_v13  ;;  %v1293_v36 = vadd.f32 %v1425_v56, %v1292_v35 }
0x17ad   :  { %1323 = vst [vmem:[%s2174_s10 + $0x18] sm:$0xff] %v1301_v34 }
0x17ae   :  { %1321 = vst [vmem:[%s2174_s10 + $0x8] sm:$0xff] %v1293_v36 }
0x181d   :  { %v1576_v37 = vpop.f32.mrb[24].mxu0 }
0x181e   :  { %v1314_v38 = vadd.f32 %v1576_v37, %v1425_v56  ;;  %v1305_v39 = vpop.f32.mrb[25].mxu0 }
0x181f   :  { %v1306_v40 = vadd.f32 %v1425_v56, %v1305_v39  ;;  %v1577_v41 = vpop.f32.mrb[26].mxu0 }
0x1820   :  { %1326 = vst [vmem:[%s2174_s10 + $0x30] sm:$0xff] %v1314_v38  ;;  %v1317_v42 = vadd.f32 %v1577_v41, %v1425_v56  ;;  %v1308_v43 = vpop.f32.mrb[27].mxu0 }
0x1821   :  { %1324 = vst [vmem:[%s2174_s10 + $0x20] sm:$0xff] %v1306_v40  ;;  %v1309_v44 = vadd.f32 %v1425_v56, %v1308_v43 }
0x1822   :  { %1327 = vst [vmem:[%s2174_s10 + $0x38] sm:$0xff] %v1317_v42 }
0x1823   :  { %1325 = vst [vmem:[%s2174_s10 + $0x28] sm:$0xff] %v1309_v44 }

</bundles_post_ra>
